<compile_context>
chip_gen: v5e
topology: v5e:2x2
jax: 0.10.0
libtpu: 0.0.40
codegen_flags: <defaults>
</compile_context>

<pallas_src>
import functools
import math

import jax
import jax.numpy as jnp
from jax import lax
from jax.experimental import pallas as pl
from jax.experimental.pallas import tpu as pltpu


def _round_up(x, m):
    return ((x + m - 1) // m) * m


def _cdiv(a, b):
    return -(-a // b)


def _online_softmax_step(q_scaled, k, v, m_ref, l_ref, acc_ref, *,
                         col_offset=None, kv_len=None):
    """One flash-attention (online softmax) update for a single kv chunk.

    q_scaled: (tq, D) in compute dtype (already multiplied by 1/sqrt(head_dim)).
    k, v:     (tk, D) in compute dtype.
    m/l/acc:  f32 VMEM scratch of shapes (tq,1), (tq,1), (tq,D).
    col_offset/kv_len: if given (compile-time decision), mask key columns >= kv_len with -inf.
    """
    # scores = q @ k^T, contracting K on its last dim (no materialized transpose), f32 accumulate.
    s = lax.dot_general(q_scaled, k, (((1,), (1,)), ((), ())),
                        preferred_element_type=jnp.float32)          # (tq, tk) f32
    if col_offset is not None:
        col = col_offset + lax.broadcasted_iota(jnp.int32, s.shape, 1)
        s = jnp.where(col < kv_len, s, -jnp.inf)

    m_prev = m_ref[...]                                              # (tq, 1)
    m_new = jnp.maximum(m_prev, jnp.max(s, axis=-1, keepdims=True))
    alpha = jnp.exp(m_prev - m_new)                                  # (tq, 1)
    p = jnp.exp(s - m_new)                                           # (tq, tk) f32

    l_ref[...] = alpha * l_ref[...] + jnp.sum(p, axis=-1, keepdims=True)
    acc_ref[...] = alpha * acc_ref[...] + jnp.dot(
        p.astype(v.dtype), v, preferred_element_type=jnp.float32)    # (tq, D) f32 accumulate
    m_ref[...] = m_new


def _attn_resident_kernel(q_ref, k_ref, v_ref, o_ref, m_ref, l_ref, acc_ref, *,
                          scale, kv_len, kv_chunk, approx_recip):
    """K/V-resident path: k_ref/v_ref hold the full (padded) sequence for this head in VMEM.

    Grid = (B*H, S/tq); the whole kv reduction happens inside the kernel, so no cross-grid
    accumulator is needed and both grid axes are 'parallel'.
    """
    m_ref[...] = jnp.full(m_ref.shape, -jnp.inf, dtype=jnp.float32)
    l_ref[...] = jnp.zeros(l_ref.shape, dtype=jnp.float32)
    acc_ref[...] = jnp.zeros(acc_ref.shape, dtype=jnp.float32)

    # Fold softmax scale into q: O(tq*D) multiplies, stays in the MXU input dtype.
    q_scaled = q_ref[...] * scale

    num_full = kv_len // kv_chunk          # chunks with no padded columns (compile-time)
    rem = kv_len - num_full * kv_chunk     # tail columns needing the -inf mask (compile-time)

    if num_full > 0:
        def body(c, carry):
            start = pl.multiple_of(c * kv_chunk, kv_chunk)
            _online_softmax_step(q_scaled,
                                 k_ref[pl.ds(start, kv_chunk), :],
                                 v_ref[pl.ds(start, kv_chunk), :],
                                 m_ref, l_ref, acc_ref)
            return carry
        lax.fori_loop(0, num_full, body, 0, unroll=False)

    if rem > 0:
        start = num_full * kv_chunk        # static
        _online_softmax_step(q_scaled,
                             k_ref[pl.ds(start, kv_chunk), :],
                             v_ref[pl.ds(start, kv_chunk), :],
                             m_ref, l_ref, acc_ref,
                             col_offset=start, kv_len=kv_len)

    inv_l = pl.reciprocal(l_ref[...], approx=approx_recip)
    o_ref[...] = (acc_ref[...] * inv_l).astype(o_ref.dtype)


def _attn_streaming_kernel(q_ref, k_ref, v_ref, o_ref, m_ref, l_ref, acc_ref, *,
                           scale, kv_len, kv_chunk, padded, approx_recip):
    """HBM-streaming fallback: grid = (B*H, S/tq, S/tk), kv axis innermost ('arbitrary')."""
    ki = pl.program_id(2)

    @pl.when(ki == 0)
    def _init():
        m_ref[...] = jnp.full(m_ref.shape, -jnp.inf, dtype=jnp.float32)
        l_ref[...] = jnp.zeros(l_ref.shape, dtype=jnp.float32)
        acc_ref[...] = jnp.zeros(acc_ref.shape, dtype=jnp.float32)

    q_scaled = q_ref[...] * scale
    col_offset = ki * kv_chunk if padded else None
    _online_softmax_step(q_scaled, k_ref[...], v_ref[...], m_ref, l_ref, acc_ref,
                         col_offset=col_offset, kv_len=kv_len)

    @pl.when(ki == pl.num_programs(2) - 1)
    def _finalize():
        inv_l = pl.reciprocal(l_ref[...], approx=approx_recip)
        o_ref[...] = (acc_ref[...] * inv_l).astype(o_ref.dtype)


def _balanced_tile(extent, target):
    """Load-balanced, 8-aligned tile size and padded extent (never falls back to full extent)."""
    n = _cdiv(extent, target)
    t = _round_up(_cdiv(extent, n), 8)
    return t, n * t


def attn(q, k, v, head_dim=None, *, q_tile=512, kv_tile=512,
         allow_bf16=True, approx_reciprocal=True, force_streaming=False):
    """softmax(q @ k^T / sqrt(head_dim)) @ v for q, k, v of shape [B, H, S, D]."""
    B, H, S, D = q.shape
    if head_dim is None:
        head_dim = D
    scale = 1.0 / math.sqrt(head_dim)
    out_dtype = q.dtype

    # f32 operands run the MXU at a small fraction of peak on every generation; bf16 operands
    # with f32 accumulation is the standard flash-attention precision.
    compute_dtype = q.dtype
    if allow_bf16 and q.dtype == jnp.float32:
        compute_dtype = jnp.bfloat16

    BH = B * H
    qr = q.reshape(BH, S, D).astype(compute_dtype)
    kr = k.reshape(BH, S, D).astype(compute_dtype)
    vr = v.reshape(BH, S, D).astype(compute_dtype)

    tq, sq_pad = _balanced_tile(S, q_tile)
    tk, sk_pad = _balanced_tile(S, kv_tile)

    if sq_pad != S:
        qr = jnp.pad(qr, ((0, 0), (0, sq_pad - S), (0, 0)))
    if sk_pad != S:
        kr = jnp.pad(kr, ((0, 0), (0, sk_pad - S), (0, 0)))
        vr = jnp.pad(vr, ((0, 0), (0, sk_pad - S), (0, 0)))

    nq = sq_pad // tq
    nk = sk_pad // tk

    itemsize = jnp.dtype(compute_dtype).itemsize
    out_itemsize = jnp.dtype(out_dtype).itemsize

    # K/V resident (per head, double-buffered) must fit a conservative VMEM budget (v7x: 64 MiB).
    kv_resident_bytes = 2 * 2 * sk_pad * D * itemsize
    resident = (not force_streaming) and (kv_resident_bytes <= 16 * 1024 * 1024)

    scratch = [
        pltpu.VMEM((tq, 1), jnp.float32),   # running row-max m
        pltpu.VMEM((tq, 1), jnp.float32),   # running denominator l
        pltpu.VMEM((tq, D), jnp.float32),   # f32 output accumulator
    ]

    if resident:
        kernel = functools.partial(_attn_resident_kernel, scale=scale, kv_len=S,
                                   kv_chunk=tk, approx_recip=approx_reciprocal)
        grid = (BH, nq)
        q_spec = pl.BlockSpec((pl.Squeezed(), tq, D), lambda b, qi: (b, qi, 0))
        # Full-S K/V block whose index ignores qi -> DMA'd once per head, not once per q tile.
        kv_spec = pl.BlockSpec((pl.Squeezed(), sk_pad, D), lambda b, qi: (b, 0, 0))
        o_spec = pl.BlockSpec((pl.Squeezed(), tq, D), lambda b, qi: (b, qi, 0))
        dim_sem = ("parallel", "parallel")
        kv_stream_factor = 1
        kv_rows_in_vmem = sk_pad
    else:
        kernel = functools.partial(_attn_streaming_kernel, scale=scale, kv_len=S,
                                   kv_chunk=tk, padded=(sk_pad != S),
                                   approx_recip=approx_reciprocal)
        grid = (BH, nq, nk)
        q_spec = pl.BlockSpec((pl.Squeezed(), tq, D), lambda b, qi, ki: (b, qi, 0))
        kv_spec = pl.BlockSpec((pl.Squeezed(), tk, D), lambda b, qi, ki: (b, ki, 0))
        o_spec = pl.BlockSpec((pl.Squeezed(), tq, D), lambda b, qi, ki: (b, qi, 0))
        dim_sem = ("parallel", "parallel", "arbitrary")
        kv_stream_factor = nq            # K/V re-streamed once per q tile
        kv_rows_in_vmem = tk

    # Modest, tile-derived scoped-VMEM limit (review: don't blanket-reserve 48 MiB on v7x).
    vmem_est = (2 * 2 * kv_rows_in_vmem * D * itemsize        # K,V double-buffered
                + 2 * tq * D * (itemsize + out_itemsize) * 2  # q,o double-buffered
                + tq * (D + 8) * 4                            # f32 scratch
                + 6 * tq * tk * 4)                            # score-tile temporaries (generous)
    vmem_limit = min(64 * 1024 * 1024, max(16 * 1024 * 1024, int(vmem_est * 1.5)))

    cost = pl.CostEstimate(
        flops=4 * BH * S * S * D,                                      # QK^T + PV
        transcendentals=BH * S * S,                                    # exp
        bytes_accessed=BH * S * D * (itemsize + out_itemsize)          # q read + o write
        + 2 * BH * S * D * itemsize * kv_stream_factor,                # K/V (restream factor)
    )

    out = pl.pallas_call(
        kernel,
        out_shape=jax.ShapeDtypeStruct((BH, sq_pad, D), out_dtype),
        grid_spec=pltpu.PrefetchScalarGridSpec(
            num_scalar_prefetch=0,
            grid=grid,
            in_specs=[q_spec, kv_spec, kv_spec],
            out_specs=o_spec,
            scratch_shapes=scratch,
        ),
        compiler_params=pltpu.CompilerParams(
            dimension_semantics=dim_sem,
            vmem_limit_bytes=vmem_limit,
        ),
        cost_estimate=cost,
    )(qr, kr, vr)

    if sq_pad != S:
        out = out[:, :S, :]
    return out.reshape(B, H, S, D)


def attn_reference(q, k, v, head_dim):
    scores = jnp.einsum("bhqd,bhkd->bhqk", q, k) / math.sqrt(head_dim)
    probs = jax.nn.softmax(scores, axis=-1)
    return jnp.einsum("bhqk,bhkd->bhqd", probs, v)


if __name__ == "__main__":
    def bf16_inputs(x):
        # Mirrors the kernel's bf16 MXU-operand quantization for apples-to-apples comparison.
        return x.astype(jnp.bfloat16).astype(jnp.float32)

    # 1) Toy shape consistent with the module (head_dim = 32).
    B, H, S, D = 2, 4, 8, 32
    kq, kk, kv_ = jax.random.split(jax.random.PRNGKey(0), 3)
    q = jax.random.normal(kq, (B, H, S, D), dtype=jnp.float32)
    k = jax.random.normal(kk, (B, H, S, D), dtype=jnp.float32)
    v = jax.random.normal(kv_, (B, H, S, D), dtype=jnp.float32)

    out = jax.block_until_ready(attn(q, k, v, head_dim=D))
    ref_bf16 = attn_reference(bf16_inputs(q), bf16_inputs(k), bf16_inputs(v), D)
    assert out.shape == (B, H, S, D) and out.dtype == q.dtype
    assert jnp.allclose(out, ref_bf16, atol=2e-2, rtol=2e-2), "mismatch (toy, bf16 MXU path)"

    # Full-precision path (f32 MXU operands, exact reciprocal) vs exact f32 reference.
    out_fp = jax.block_until_ready(
        attn(q, k, v, head_dim=D, allow_bf16=False, approx_reciprocal=False))
    ref_f32 = attn_reference(q, k, v, D)
    assert jnp.allclose(out_fp, ref_f32, atol=1e-4, rtol=1e-4), "mismatch (toy, f32 path)"

    # 2) Multi-tile resident-K/V path (2 q-tiles x 2 kv-chunks per head).
    B2, H2, S2, D2 = 1, 2, 1024, 64
    kq2, kk2, kv2 = jax.random.split(jax.random.PRNGKey(1), 3)
    q2 = jax.random.normal(kq2, (B2, H2, S2, D2), dtype=jnp.float32)
    k2 = jax.random.normal(kk2, (B2, H2, S2, D2), dtype=jnp.float32)
    v2 = jax.random.normal(kv2, (B2, H2, S2, D2), dtype=jnp.float32)
    ref2 = attn_reference(bf16_inputs(q2), bf16_inputs(k2), bf16_inputs(v2), D2)
    out2 = jax.block_until_ready(attn(q2, k2, v2, head_dim=D2))
    assert jnp.allclose(out2, ref2, atol=2e-2, rtol=2e-2), "mismatch (resident K/V path)"

    # 3) Same data through the HBM-streaming fallback (3-axis grid, kv reduction axis).
    out2s = jax.block_until_ready(attn(q2, k2, v2, head_dim=D2, force_streaming=True))
    assert jnp.allclose(out2s, ref2, atol=2e-2, rtol=2e-2), "mismatch (streaming path)"

    # 4) Awkward sequence length (not a multiple of 8): exercises padding + -inf key masking.
    B3, H3, S3, D3 = 1, 2, 75, 32
    kq3, kk3, kv3 = jax.random.split(jax.random.PRNGKey(2), 3)
    q3 = jax.random.normal(kq3, (B3, H3, S3, D3), dtype=jnp.float32)
    k3 = jax.random.normal(kk3, (B3, H3, S3, D3), dtype=jnp.float32)
    v3 = jax.random.normal(kv3, (B3, H3, S3, D3), dtype=jnp.float32)
    ref3 = attn_reference(bf16_inputs(q3), bf16_inputs(k3), bf16_inputs(v3), D3)
    out3 = jax.block_until_ready(attn(q3, k3, v3, head_dim=D3))
    assert jnp.allclose(out3, ref3, atol=2e-2, rtol=2e-2), "mismatch (padded/masked resident)"
    out3s = jax.block_until_ready(attn(q3, k3, v3, head_dim=D3, force_streaming=True))
    assert jnp.allclose(out3s, ref3, atol=2e-2, rtol=2e-2), "mismatch (padded/masked streaming)"

    print("KERNEL_OK")
</pallas_src>

<mosaic_0001>
module attributes {stable_mosaic.version = 11 : i64} {
  func.func @_attn_resident_kernel(%arg0: i32, %arg1: i32, %arg2: memref<1x8x32xbf16, #tpu.memory_space<vmem>>, %arg3: memref<1x8x32xbf16, #tpu.memory_space<vmem>>, %arg4: memref<1x8x32xbf16, #tpu.memory_space<vmem>>, %arg5: memref<1x8x32xf32, #tpu.memory_space<vmem>>, %arg6: memref<8x1xf32, #tpu.memory_space<vmem>>, %arg7: memref<8x1xf32, #tpu.memory_space<vmem>>, %arg8: memref<8x32xf32, #tpu.memory_space<vmem>>) attributes {dimension_semantics = [#tpu.dimension_semantics<parallel>, #tpu.dimension_semantics<parallel>], iteration_bounds = array<i64: 8, 1>, scalar_prefetch = 0 : i64, scratch_operands = 3 : i64, tpu.core_type = #tpu.core_type<tc>, window_params = [{transform_indices = @transform_0, window_bounds = array<i64: 1, 8, 32>}, {transform_indices = @transform_1, window_bounds = array<i64: 1, 8, 32>}, {transform_indices = @transform_2, window_bounds = array<i64: 1, 8, 32>}, {transform_indices = @transform_3, window_bounds = array<i64: 1, 8, 32>}]} {
    %cst = arith.constant 0xFF800000 : f32
    %0 = vector.broadcast %cst : f32 to vector<8x1xf32>
    %c0 = arith.constant 0 : index
    %c0_0 = arith.constant 0 : index
    %1 = vector.load %arg6[%c0, %c0_0] : memref<8x1xf32, #tpu.memory_space<vmem>>, vector<8x1xf32>
    tpu.vector_store %arg6[%c0, %c0_0], %0 {strides = array<i32>} : memref<8x1xf32, #tpu.memory_space<vmem>>, vector<8x1xf32>,
    %cst_1 = arith.constant 0.000000e+00 : f32
    %2 = vector.broadcast %cst_1 : f32 to vector<8x1xf32>
    %c0_2 = arith.constant 0 : index
    %c0_3 = arith.constant 0 : index
    %3 = vector.load %arg7[%c0_2, %c0_3] : memref<8x1xf32, #tpu.memory_space<vmem>>, vector<8x1xf32>
    tpu.vector_store %arg7[%c0_2, %c0_3], %2 {strides = array<i32>} : memref<8x1xf32, #tpu.memory_space<vmem>>, vector<8x1xf32>,
    %cst_4 = arith.constant 0.000000e+00 : f32
    %4 = vector.broadcast %cst_4 : f32 to vector<8x32xf32>
    %c0_5 = arith.constant 0 : index
    %c0_6 = arith.constant 0 : index
    %5 = vector.load %arg8[%c0_5, %c0_6] : memref<8x32xf32, #tpu.memory_space<vmem>>, vector<8x32xf32>
    tpu.vector_store %arg8[%c0_5, %c0_6], %4 {strides = array<i32>} : memref<8x32xf32, #tpu.memory_space<vmem>>, vector<8x32xf32>,
    %c0_7 = arith.constant 0 : index
    %c0_8 = arith.constant 0 : index
    %c0_9 = arith.constant 0 : index
    %6 = vector.load %arg2[%c0_7, %c0_8, %c0_9] : memref<1x8x32xbf16, #tpu.memory_space<vmem>>, vector<1x8x32xbf16>
    %7 = vector.shape_cast %6 : vector<1x8x32xbf16> to vector<8x32xbf16>
    %cst_10 = arith.constant 1.767580e-01 : bf16
    %8 = vector.broadcast %cst_10 : bf16 to vector<8x32xbf16>
    %9 = arith.mulf %7, %8 : vector<8x32xbf16>
    %c0_i32 = arith.constant 0 : i32
    %c8_i32 = arith.constant 8 : i32
    %10 = arith.muli %c0_i32, %c8_i32 : i32
    %11 = tpu.assume_multiple %10, 8 : i32
    %c0_11 = arith.constant 0 : index
    %12 = arith.index_cast %11 : i32 to index
    %c0_12 = arith.constant 0 : index
    %13 = vector.load %arg3[%c0_11, %12, %c0_12] : memref<1x8x32xbf16, #tpu.memory_space<vmem>>, vector<1x8x32xbf16>
    %14 = vector.shape_cast %13 : vector<1x8x32xbf16> to vector<8x32xbf16>
    %c0_13 = arith.constant 0 : index
    %15 = arith.index_cast %11 : i32 to index
    %c0_14 = arith.constant 0 : index
    %16 = vector.load %arg4[%c0_13, %15, %c0_14] : memref<1x8x32xbf16, #tpu.memory_space<vmem>>, vector<1x8x32xbf16>
    %17 = vector.shape_cast %16 : vector<1x8x32xbf16> to vector<8x32xbf16>
    %cst_15 = arith.constant dense<0.000000e+00> : vector<8x8xf32>
    %18 = tpu.matmul %9, %14, %cst_15 {dimension_numbers = #tpu.dot_dimension_numbers<[1], [1], [0], [0], [0, 0, 1, 0], [], []>} : vector<8x32xbf16>, vector<8x32xbf16>, vector<8x8xf32> -> vector<8x8xf32>
    %c0_16 = arith.constant 0 : index
    %c0_17 = arith.constant 0 : index
    %19 = vector.load %arg6[%c0_16, %c0_17] : memref<8x1xf32, #tpu.memory_space<vmem>>, vector<8x1xf32>
    %cst_18 = arith.constant dense<0xFF800000> : vector<8xf32>
    %20 = vector.multi_reduction <maximumf>, %18, %cst_18 [1] : vector<8x8xf32> to vector<8xf32>
    %21 = vector.shape_cast %20 : vector<8xf32> to vector<8x1xf32>
    %22 = arith.maximumf %19, %21 : vector<8x1xf32>
    %23 = arith.subf %19, %22 : vector<8x1xf32>
    %24 = math.exp %23 : vector<8x1xf32>
    %25 = vector.broadcast %22 : vector<8x1xf32> to vector<8x8xf32>
    %26 = arith.subf %18, %25 : vector<8x8xf32>
    %27 = math.exp %26 : vector<8x8xf32>
    %c0_19 = arith.constant 0 : index
    %c0_20 = arith.constant 0 : index
    %28 = vector.load %arg7[%c0_19, %c0_20] : memref<8x1xf32, #tpu.memory_space<vmem>>, vector<8x1xf32>
    %29 = arith.mulf %24, %28 : vector<8x1xf32>
    %cst_21 = arith.constant dense<0.000000e+00> : vector<8xf32>
    %30 = vector.multi_reduction <add>, %27, %cst_21 [1] : vector<8x8xf32> to vector<8xf32>
    %31 = vector.shape_cast %30 : vector<8xf32> to vector<8x1xf32>
    %32 = arith.addf %29, %31 : vector<8x1xf32>
    %c0_22 = arith.constant 0 : index
    %c0_23 = arith.constant 0 : index
    %33 = vector.load %arg7[%c0_22, %c0_23] : memref<8x1xf32, #tpu.memory_space<vmem>>, vector<8x1xf32>
    tpu.vector_store %arg7[%c0_22, %c0_23], %32 {strides = array<i32>} : memref<8x1xf32, #tpu.memory_space<vmem>>, vector<8x1xf32>,
    %c0_24 = arith.constant 0 : index
    %c0_25 = arith.constant 0 : index
    %34 = vector.load %arg8[%c0_24, %c0_25] : memref<8x32xf32, #tpu.memory_space<vmem>>, vector<8x32xf32>
    %35 = vector.broadcast %24 : vector<8x1xf32> to vector<8x32xf32>
    %36 = arith.mulf %35, %34 : vector<8x32xf32>
    %37 = arith.truncf %27 : vector<8x8xf32> to vector<8x8xbf16>
    %cst_26 = arith.constant dense<0.000000e+00> : vector<8x32xf32>
    %38 = tpu.matmul %37, %17, %cst_26 {dimension_numbers = #tpu.dot_dimension_numbers<[1], [0], [0], [1], [0, 0, 1, 1], [], []>} : vector<8x8xbf16>, vector<8x32xbf16>, vector<8x32xf32> -> vector<8x32xf32>
    %39 = arith.addf %36, %38 : vector<8x32xf32>
    %c0_27 = arith.constant 0 : index
    %c0_28 = arith.constant 0 : index
    %40 = vector.load %arg8[%c0_27, %c0_28] : memref<8x32xf32, #tpu.memory_space<vmem>>, vector<8x32xf32>
    tpu.vector_store %arg8[%c0_27, %c0_28], %39 {strides = array<i32>} : memref<8x32xf32, #tpu.memory_space<vmem>>, vector<8x32xf32>,
    %c0_29 = arith.constant 0 : index
    %c0_30 = arith.constant 0 : index
    %41 = vector.load %arg6[%c0_29, %c0_30] : memref<8x1xf32, #tpu.memory_space<vmem>>, vector<8x1xf32>
    tpu.vector_store %arg6[%c0_29, %c0_30], %22 {strides = array<i32>} : memref<8x1xf32, #tpu.memory_space<vmem>>, vector<8x1xf32>,
    %c1_i32 = arith.constant 1 : i32
    %c0_31 = arith.constant 0 : index
    %c0_32 = arith.constant 0 : index
    %42 = vector.load %arg7[%c0_31, %c0_32] : memref<8x1xf32, #tpu.memory_space<vmem>>, vector<8x1xf32>
    %43 = tpu.reciprocal %42 {approx = true} : vector<8x1xf32> -> vector<8x1xf32>
    %c0_33 = arith.constant 0 : index
    %c0_34 = arith.constant 0 : index
    %44 = vector.load %arg8[%c0_33, %c0_34] : memref<8x32xf32, #tpu.memory_space<vmem>>, vector<8x32xf32>
    %45 = vector.broadcast %43 : vector<8x1xf32> to vector<8x32xf32>
    %46 = arith.mulf %44, %45 : vector<8x32xf32>
    %c0_35 = arith.constant 0 : index
    %c0_36 = arith.constant 0 : index
    %c0_37 = arith.constant 0 : index
    %47 = vector.load %arg5[%c0_35, %c0_36, %c0_37] : memref<1x8x32xf32, #tpu.memory_space<vmem>>, vector<1x8x32xf32>
    %48 = vector.shape_cast %47 : vector<1x8x32xf32> to vector<8x32xf32>
    %49 = vector.shape_cast %46 : vector<8x32xf32> to vector<1x8x32xf32>
    tpu.vector_store %arg5[%c0_35, %c0_36, %c0_37], %49 {strides = array<i32>} : memref<1x8x32xf32, #tpu.memory_space<vmem>>, vector<1x8x32xf32>,
    return
  }
  func.func @transform_0(%arg0: i32, %arg1: i32) -> (i32, i32, i32) {
    %c0_i32 = arith.constant 0 : i32
    %c0_i32_0 = arith.constant 0 : i32
    return %arg0, %arg1, %c0_i32 : i32, i32, i32
  }
  func.func @transform_1(%arg0: i32, %arg1: i32) -> (i32, i32, i32) {
    %c0_i32 = arith.constant 0 : i32
    %c0_i32_0 = arith.constant 0 : i32
    %c0_i32_1 = arith.constant 0 : i32
    return %arg0, %c0_i32, %c0_i32_0 : i32, i32, i32
  }
  func.func @transform_2(%arg0: i32, %arg1: i32) -> (i32, i32, i32) {
    %c0_i32 = arith.constant 0 : i32
    %c0_i32_0 = arith.constant 0 : i32
    %c0_i32_1 = arith.constant 0 : i32
    return %arg0, %c0_i32, %c0_i32_0 : i32, i32, i32
  }
  func.func @transform_3(%arg0: i32, %arg1: i32) -> (i32, i32, i32) {
    %c0_i32 = arith.constant 0 : i32
    %c0_i32_0 = arith.constant 0 : i32
    return %arg0, %arg1, %c0_i32 : i32, i32, i32
  }
}

</mosaic_0001>

<bundles_post_ra>
// kernel: tpu_custom_call.1
= control target key start
LH: loop header
LB: loop body
LE: loop exit
PB: predicated region body
PF: predicated region fallthrough
CT: control target
= control target key end

     0   :  { %s990_s0 = inlined_call_operand.hbm [shape: bf16[8,8,32], index: 0, kind: input, shape index: {}]   ;;  %s991_s1 = inlined_call_operand.hbm [shape: bf16[8,8,32], index: 1, kind: input, shape index: {}]   ;;  %s992_s2 = inlined_call_operand.hbm [shape: bf16[8,8,32], index: 2, kind: input, shape index: {}]   ;;  %s993_s3 = inlined_call_operand.hbm [shape: f32[8,8,32], index: 3, kind: output, shape index: {}]  }
   0x1   :  { %996 = sst [smem:[#allocation18_spill]] %s991_s1 }
   0x2   :  { %8 = vsyncpa [#allocation6], 0 }
   0x3   :  { %10 = vsyncpa [#allocation6 + $0x1], 0 }
   0x4   :  { %11 = vsyncpa [#allocation9], 0 }
   0x5   :  { %13 = vsyncpa [#allocation9 + $0x1], 0 }
   0x6   :  { %14 = vsyncpa [#allocation7], 0 }
   0x7   :  { %16 = vsyncpa [#allocation7 + $0x1], 0  ;;  %s822_s12 = smov 0   ;;  %s824_s13 = smov 0  }
   0x8   :  { %s826_s14 = smov 0   ;;  %s828_s15 = smov 0  }
   0x9   :  { %s830_s16 = smov 0   ;;  %s832_s17 = smov 0  }
   0xa LB: > { %997 = sst [smem:[#allocation15_spill]] %s793_s16  ;;  %s853_s18 = sadd.s32 4294967295, %s797_s17   ;;  %s797_s17 = sphi %s832_s17, %s22_s17   ;;  %s793_s16 = sphi %s830_s16, %s1013_s16   ;;  %s789_s15 = sphi %s828_s15, %s1008_s15   ;;  %s785_s14 = sphi %s826_s14, %s1012_s14   ;;  %s781_s13 = sphi %s824_s13, %s1011_s13   ;;  %s777_s12 = sphi %s822_s12, %s1010_s12  }
   0xb   : > { %s517_s19 = sadd.s32 4294967294, %s797_s17   ;;  %s34_s20 = sadd.s32 1, %s793_s16 }
   0xc   : > { %s43_s21 = sadd.s32 1, %s785_s14  ;;  %p36_p0 = scmp.ge.s32.totalorder %s34_s20, 8 }
   0xd   : > { %p50_p1 = scmp.ne.s32.totalorder %s785_s14, %s781_s13  ;;  %p51_p2 = scmp.eq.s32.totalorder %s797_s17, 0 }
   0xe   : > { %p56_p3 = scmp.ne.s32.totalorder %s781_s13, %s777_s12  ;;  %s1015_s20 = smov (%p36_p0, %s34_s20), 0 }
   0xf   : > { %998 = sst [smem:[#allocation16_spill]] %s1015_s20  ;;  %p865_p4 = por %p51_p2, %p50_p1 }
  0x10   : > { %p57_p5 = scmp.eq.s32.totalorder %s853_s18, 0  ;;  %s38_s23 = ssub.s32 %s793_s16, %s1015_s20 }
  0x11   : > { %p134_p6 = scmp.eq.s32.totalorder %s853_s18, 7  ;;  %p41_p7 = scmp.eq.s32.totalorder %s38_s23, 0 }
  0x12   : > { %p873_p8 = por %p57_p5, %p56_p3  ;;  %p140_p10 = scmp.eq.s32.totalorder %s517_s19, 7 }
  0x13   : > { %p877_p9 = por %p134_p6, %p50_p1  ;;  %p559_p12 = scmp.lt.s32.totalorder %s797_s17, 8 }
  0x14   : > { %s882_s26 = scalar_select %p41_p7, %s785_s14, %s43_s21  }
  0x15   : > { %p884_p11 = por %p140_p10, %p56_p3  ;;  %s160_s28 = sand.u32 1, %s785_s14  }
  0x16   : > { %1002 = sst [smem:[#allocation17_spill]] %s882_s26  ;;  %s520_s29 = sshll.u32 %s160_s28, 2 }
  0x17   : > { %s521_s30 = sshll.u32 %s793_s16, 2  ;;  %p893_p13 = pnand %p559_p12, %p865_p4 }
  0x18   : > { %s180_s5 = sand.u32 1, %s797_s17   ;;  %s1005_s1 = sld [smem:[#allocation18_spill]] }
  0x19   : > { %s184_s10 = scalar_lea.vmem [#allocation8], %s520_s29  ;;  %s181_s19 = scalar_lea.sflag [#allocation9], %s180_s5 }
  0x1a   : > { %s192_s11 = sshll.u32 %s184_s10, 4  ;;  %p526_p0 = scmp.ge.s32.totalorder %s797_s17, 1  ;;  %s193_s11 = int_to_ptr.vmem [resolvable:$true] %s192_s11 }
  0x1b   : > { %p216_p1 = scmp.lt.s32.totalorder %s797_s17, 9  ;;  %s169_s6 = scalar_lea.hbm %s990_s0, %s521_s30 }
  0x1c   : > { %s171_s7 = sshll.u32 %s169_s6, 4  ;;  %s161_s10 = scalar_lea.sflag [#allocation6], %s160_s28  ;;  %s172_s7 = int_to_ptr.hbm [resolvable:$true] %s171_s7 }
  0x1d   : > { %p905_p2 = pnand %p526_p0, %p216_p1  ;;  %s203_s16 = scalar_lea.vmem [#allocation10], %s520_s29 }
  0x1e   : > { %s188_s8 = scalar_lea.hbm %s1005_s1, %s521_s30  ;;  %s211_s26 = sshll.u32 %s203_s16, 4  ;;  %s212_s26 = int_to_ptr.vmem [resolvable:$true] %s211_s26 }
  0x1f   : > { %s190_s9 = sshll.u32 %s188_s8, 4  ;;  %s164_s8 = scalar_lea.vmem [#allocation5], %s520_s29  ;;  %s191_s9 = int_to_ptr.hbm [resolvable:$true] %s190_s9 }
  0x20   : > { %551 = dma.hbm_to_vmem [thread:$0]  (!%p893_p13), %s191_s9, 64, %s193_s11, %s181_s19  }
  0x21   : > { %s173_s1 = sshll.u32 %s164_s8, 4  ;;  %s207_s11 = scalar_lea.hbm %s992_s2, %s521_s30  ;;  %s174_s1 = int_to_ptr.vmem [resolvable:$true] %s173_s1 }
  0x22   : > { %548 = dma.hbm_to_vmem [thread:$0]  (!%p893_p13), %s172_s7, 64, %s174_s1, %s161_s10  }
  0x23   : > { %s209_s20 = sshll.u32 %s207_s11, 4  ;;  %220 = sbr.rel (%p905_p2) target bundleno = 654 (0x28e), region = 32  ;;  %s210_s20 = int_to_ptr.hbm [resolvable:$true] %s209_s20 }
  0x24   : > { %554 = dma.hbm_to_vmem [thread:$0]  (!%p893_p13), %s210_s20, 64, %s212_s26, %s181_s19  }
  0x25   : > { %s922_s22 = sand.u32 (!%p905_p2), 1, %s781_s13  }
  0x26   : > { %s925_s1 = sshll.u32 (!%p905_p2), %s922_s22, 2  ;;  %s223_s28 = scalar_lea.sflag (!%p905_p2), [#allocation6], %s922_s22 }
  0x27   : > { %s226_s30 = scalar_lea.vmem (!%p905_p2), [#allocation5], %s925_s1 }
  0x28   : > { %764 = dma.done.wait (%p873_p8), %s223_s28, 64  }
  0x29   : > { %766 = vsyncadd (%p873_p8), %s223_s28, 4294967232  ;;  %s232_s16 = sand.u32 1, %s853_s18   ;;  %s236_s26 = scalar_lea.vmem [#allocation8], %s925_s1 }
  0x2a   : > { %s233_s20 = scalar_lea.sflag [#allocation9], %s232_s16 }
  0x2b   : > { %768 = dma.done.wait (%p873_p8), %s233_s20, 128  }
  0x2c   : > { %770 = vsyncadd (%p873_p8), %s233_s20, 4294967168  ;;  %vm284_vm0 = vcmask 261120   ;;  %v799_v0 = vmov 0.0   ;;  %v290_v1 = vld [vmem:[%s236_s26] sm:$0xf]  ;;  %vm281_vm1 = vcmask 7168  }
  0x2d   : > { %285 = vst.msk [vmem:[#allocation4] sm:$0xff] %vm284_vm0, %v799_v0  ;;  %v286_v2 = vld [vmem:[%s226_s30] sm:$0xf]  ;;  %v296_v3 = vsel %vm284_vm0, %v290_v1, 0  ;;  %v800_v7 = vmov -inf   ;;  %vm312_vm2 = vcmask 64512  }
  0x2e   : > { %v287_v4 = vunpack.c.l.bf16 %v286_v2  ;;  %305 = vmatpush.bf16.xpose.msra.mxu0 %v296_v3  ;;  %282 = vst.msk [vmem:[#allocation2] sm:$0xff] %vm281_vm1, %v800_v7  ;;  %v801_v11 = vmov 0   ;;  %s246_s18 = scalar_lea.vmem [#allocation10], %s925_s1  ;;  %vm346_vm3 = vcmask 1043456   ;;  %s530_s24 = sshll.u32 %s922_s22, 3 }
  0x2f   : > { %283 = vst.msk [vmem:[#allocation3] sm:$0xff] %vm281_vm1, %v799_v0  ;;  %612 = vset.pattern.permute.xlu0 %v801_v11  ;;  %613 = vset.pattern.permute.xlu1 %v801_v11  ;;  %v291_v16 = vld [vmem:[%s246_s18] sm:$0xf]  ;;  %s534_s29 = sshll.u32 %s789_s15, 3  ;;  %s279_s23 = scalar_lea.vmem [#allocation11], %s530_s24 }
  0x30   : > { %v288_v5 = vmul.f32 0.17675781, %v287_v4  ;;  %614 = vset.pattern.permute.xlu2 %v801_v11  ;;  %v348_v17 = vsel %vm346_vm3, %v291_v16, 0  ;;  %s388_s21 = scalar_lea.hbm %s993_s3, %s534_s29  ;;  %s390_s6 = sshll.u32 %s279_s23, 4  ;;  %s391_s6 = int_to_ptr.vmem [resolvable:$true] %s390_s6 }
  0x31   : > { %357 = vmatpush.bf16.msra.mxu1 %v348_v17  ;;  %s392_s7 = sshll.u32 %s388_s21, 4  ;;  %s377_s8 = scalar_lea.sflag [#allocation7], %s922_s22  ;;  %s393_s7 = int_to_ptr.hbm [resolvable:$true] %s392_s7 }
  0x32   : > { %v289_v6 = vpack.c.bf16 %v288_v5, %v288_v5  ;;  %s725_s10 = sshra.s32 %s393_s7, 4  ;;  %s731_s11 = scalar_lea.hbm %s993_s3, 64  ;;  %s726_s10 = int_to_ptr.hbm [resolvable:$true] %s725_s10 }
  0x33   : > { %s727_s5 = scalar_lea.hbm %s726_s10, 8  ;;  %p732_p6 = scmp.lt.s32.totalorder %s726_s10, %s993_s3 }
  0x34   : > { %v335_v34 = vld [vmem:[#allocation4] sm:$0xff]  ;;  %p728_p3 = scmp.ne.s32.totalorder %s726_s10, %s727_s5  ;;  %p733_p7 = scmp.lt.s32.totalorder %s731_s11, %s727_s5 }
  0x35   : > { %531 = vmatmul.msk.bf16.vlgmr.msra.gmra.mxu0 %vm284_vm0, %v289_v6  ;;  %v311_v12 = vld [vmem:[#allocation2] sm:$0xff] }
  0x36   : > { %v328_v26 = vld [vmem:[#allocation3] sm:$0xff]  ;;  %p729_p4 = pnand %p728_p3, %p877_p9  ;;  %p734_p8 = por %p733_p7, %p732_p6 }
  0x38   : > { %p730_p5 = pneg %p729_p4 }
  0x3a   : > { %p735_p10 = pnand %p734_p8, %p730_p5 }
  0xb2   : > { %v307_v8 = vpop.f32.mrf.mxu0 }
  0xb3   : > { %v313_v9 = vsel %vm312_vm2, %v307_v8, -inf }
  0xb4   : > { %314 = vmax.xlane.f32.xlu0 %v313_v9 }
  0xba   : > { %v309_v10 = vpop.f32.mrf.mxu0 }
 0x127   : > { %v315_v13 = vpop.xlane.xlu0 %314 }
 0x128   : > { %v316_v14 = vmax.f32 %v311_v12, %v315_v13 }
 0x12a   : > { %v317_v15 = vsub.f32 %v311_v12, %v316_v14  ;;  %365 = vst.msk [vmem:[#allocation2] sm:$0xff] %vm281_vm1, %v316_v14  ;;  %322 = vperm.xlu0 %612, %v316_v14  }
 0x12c   : > { %v318_v24 = vmul.f32 1.442695, %v317_v15 }
 0x19c   : > { %v323_v18 = vpop.permute.xlu0 %322 }
 0x19d   : > { %v325_v19 = vsub.f32 %v307_v8, %v323_v18 }
 0x19f   : > { %v326_v20 = vmul.f32 1.442695, %v325_v19 }
 0x1a1   : > { %615 = vpow2.f32 %v326_v20 }
 0x1a2   : > { %617 = vpow2.f32 %v318_v24 }
 0x1a7   : > { %v616_v21 = vpop.eup %615 }
 0x1a8   : > { %v330_v22 = vsel %vm312_vm2, %v616_v21, 0.0  ;;  %v342_v23 = vpack.c.bf16 %v616_v21, %v616_v21  ;;  %v618_v25 = vpop.eup %617 }
 0x1a9   : > { %331 = vadd.xlane.f32.xlu1 %v330_v22  ;;  %v329_v27 = vmul.f32 %v618_v25, %v328_v26 }
 0x1aa   : > { %532 = vmatmul.msk.bf16.vlgmr.msra.gmra.mxu1 %vm312_vm2, %v342_v23 }
 0x1c2   : > { %338 = vperm.xlu1 %613, %v618_v25  }
 0x21c   : > { %v332_v28 = vpop.xlane.xlu1 %331 }
 0x21d   : > { %v333_v29 = vadd.f32 %v332_v28, %v329_v27 }
 0x21f   : > { %334 = vst.msk [vmem:[#allocation3] sm:$0xff] %vm281_vm1, %v333_v29 }
 0x226   : > { %v366_v30 = vld [vmem:[#allocation3] sm:$0xff] }
 0x227   : > { %v359_v31 = vpop.f32.mrf.mxu1  ;;  %619 = vrcp.f32 %v366_v30 }
 0x22d   : > { %v620_v32 = vpop.eup %619 }
 0x22e   : > { %371 = vperm.xlu2 %614, %v620_v32  }
 0x22f   : > { %v361_v33 = vpop.f32.mrf.mxu1 }
 0x234   : > { %v339_v35 = vpop.permute.xlu1 %338 }
 0x235   : > { %v341_v36 = vmul.f32 %v339_v35, %v335_v34 }
 0x237   : > { %v363_v37 = vadd.f32 %v359_v31, %v341_v36 }
 0x239   : > { %364 = vst.msk [vmem:[#allocation4] sm:$0xff] %vm284_vm0, %v363_v37 }
 0x240   : > { %v368_v38 = vld [vmem:[#allocation4] sm:$0xff] }
 0x288   : > { %v372_v39 = vpop.permute.xlu2 %371 }
 0x289   : > { %v374_v40 = vmul.f32 %v372_v39, %v368_v38 }
 0x28b   : > { %375 = vst.msk [vmem:[%s279_s23] sm:$0xff] %vm284_vm0, %v374_v40 }
 0x28c   : > { %738 = shalt.err (!%p735_p10)
}
 0x28d   : > { %543 = dma.vmem_to_hbm [thread:$0]  (%p877_p9), %s391_s6, 128, %s393_s7, %s377_s8  }
 0x28e PF: > { %p560_p12 = scmp.ge.s32.totalorder %s797_s17, 2  ;;  %s404_s22 = sand.u32 1, %s777_s12  }
 0x28f   : > { %s405_s30 = scalar_lea.sflag [#allocation7], %s404_s22 }
 0x290   : > { %p556_p13 = pnand %p560_p12, %p884_p11 }
 0x292   : > { %p557_p0 = pneg %p556_p13 }
 0x294   : > { %772 = dma.done.wait (%p557_p0), %s405_s30, 128  }
 0x295   : > { %774 = vsyncadd (%p557_p0), %s405_s30, 4294967168  ;;  %s22_s17 = sadd.s32 1, %s797_s17   ;;  %s1007_s16 = sld [smem:[#allocation17_spill]] }
 0x296   : > { %p19_p1 = scmp.ge.s32.totalorder %s22_s17, 10   ;;  %s1008_s15 = sld [smem:[#allocation15_spill]] }
 0x297   : > { %s1009_s25 = sld [smem:[#allocation16_spill]]  ;;  %s1010_s12 = smov %s781_s13 }
 0x298   : > { %s1011_s13 = smov %s785_s14 }
 0x299   :  { %21 = sbr.rel (!%p19_p1) target bundleno = 10 (0xa), region = 101 }
 0x29b   : > { %s1012_s14 = smov %s1007_s16 }
 0x29d   : > { %s1013_s16 = smov %s1009_s25 }
 0x29e   :  { %411 = vsyncpa [#allocation6], 1 }
 0x29f   :  { %413 = vsyncpa [#allocation6 + $0x1], 1 }
 0x2a0   :  { %414 = vsyncpa [#allocation9], 1 }
 0x2a1   :  { %416 = vsyncpa [#allocation9 + $0x1], 1 }
 0x2a2   :  { %417 = vsyncpa [#allocation7], 1 }
 0x2a3   :  { %419 = vsyncpa [#allocation7 + $0x1], 1 }

</bundles_post_ra>
